<compile_context>
chip_gen: v7x
topology: tpu7x:2x2x1
jax: 0.10.0
libtpu: 0.0.40
codegen_flags: <defaults>
</compile_context>

<pallas_src>
import functools

import jax
import jax.numpy as jnp
import numpy as np
from jax.experimental import pallas as pl
from jax.experimental.pallas import tpu as pltpu


def get_depth(num_classes):
    if num_classes == 10:
        return 20
    elif num_classes == 100:
        return 32
    return 20


# ----------------------------- Pallas kernel -------------------------------


def _ie_kernel(patches_ref, onehot_ref, cw_ref, cb_ref, fw_ref, fb_ref,
               pool_ref, gsum_ref, csel_ref,
               logits_ref, mixture_ref, ce_ref):
    """One grid step == one batch tile; experts are folded into the lane dim.

    patches_ref : [bt*HW, K]        im2col patches for this batch tile
    onehot_ref  : [bt, E*C]         one-hot targets tiled across experts
    cw_ref      : [K, E*Cmid]       all experts' conv weights, lane-folded
    cb_ref      : [1, E*Cmid]
    fw_ref      : [E*Cmid, E*C]     block-diagonal classifier weights
    fb_ref      : [1, E*C]
    pool_ref    : [bt, bt*HW]       (1/HW) block-averaging matrix (GAP on MXU)
    gsum_ref    : [E*C, E*C]        1 iff same expert (softmax denom on MXU)
    csel_ref    : [E*C, C]          1 iff same class   (mixture sum on MXU)
    logits_ref  : [bt, E*C]         all experts' logits, one lane-folded slab
    mixture_ref : [bt, C]           sum over experts of softmax(logits)
    ce_ref      : [bt, 1]           per-sample CE summed over experts
    """
    # 3x3 conv (pad=1) for ALL experts as one flat 2-D MXU matmul.
    h = jnp.dot(patches_ref[...], cw_ref[...],
                preferred_element_type=jnp.float32) + cb_ref[...]
    h = jnp.maximum(h, 0.0)                                     # ReLU

    # Global average pool as an MXU matmul with the block-averaging matrix.
    pooled = jnp.dot(pool_ref[...], h,
                     preferred_element_type=jnp.float32)        # [bt, E*Cmid]

    # Block-diagonal FC -> every expert's logits in one lane-dense slab.
    logits = jnp.dot(pooled, fw_ref[...],
                     preferred_element_type=jnp.float32) + fb_ref[...]
    logits_ref[...] = logits                                    # [bt, E*C]

    # Per-expert softmax / log-softmax on the slab.  A single row-wise max is a
    # valid (shift-invariant) stabilizer for every expert's chunk.
    m = jnp.max(logits, axis=-1, keepdims=True)
    z = logits - m
    ez = jnp.exp(z)
    # Per-expert denominator via the same-expert 0/1 matmul (no lane reshape).
    denom = jnp.dot(ez, gsum_ref[...], preferred_element_type=jnp.float32)
    probs = ez * pl.reciprocal(denom, approx=True)              # EUP vrcp
    logprob = z - jnp.log(denom)

    # mixture_pred = sum_e softmax(output_e): fold expert chunks back onto C.
    mixture_ref[...] = jnp.dot(probs, csel_ref[...],
                               preferred_element_type=jnp.float32)

    # Cross-entropy summed over experts, per sample (wrapper takes batch mean).
    ce_ref[...] = -jnp.sum(onehot_ref[...] * logprob, axis=-1, keepdims=True)


# ------------------------------ glue (JAX) ---------------------------------


def _im2col_3x3(x):
    """x: NCHW [B, Cin, H, W] -> patches [B, H*W, Cin*9] (pad=1, stride=1)."""
    b, cin, h, w = x.shape
    xp = jnp.pad(x, ((0, 0), (0, 0), (1, 1), (1, 1)))
    cols = []
    for ki in range(3):
        for kj in range(3):
            cols.append(xp[:, :, ki:ki + h, kj:kj + w])        # [B, Cin, H, W]
    p = jnp.stack(cols, axis=2)                                # [B, Cin, 9, H, W]
    p = jnp.transpose(p, (0, 3, 4, 1, 2))                      # [B, H, W, Cin, 9]
    return p.reshape(b, h * w, cin * 9)


def init_ie_params(key, model_num, num_classes, cin, cmid):
    """Deterministic parameters, PyTorch layouts, stacked over experts."""
    k1, k2, k3, k4 = jax.random.split(key, 4)
    conv_scale = 1.0 / np.sqrt(cin * 9)
    fc_scale = 1.0 / np.sqrt(cmid)
    return {
        'conv_w': conv_scale * jax.random.normal(
            k1, (model_num, cmid, cin, 3, 3), jnp.float32),
        'conv_b': conv_scale * jax.random.normal(
            k2, (model_num, cmid), jnp.float32),
        'fc_w': fc_scale * jax.random.normal(
            k3, (model_num, num_classes, cmid), jnp.float32),
        'fc_b': fc_scale * jax.random.normal(
            k4, (model_num, num_classes), jnp.float32),
    }


@functools.partial(jax.jit, static_argnames=('num_classes',))
def ie_forward(x, target, params, *, num_classes):
    """Returns (total_loss, per_expert_logits [E,B,C], mixture_pred [B,C])."""
    b, cin, h, w = x.shape
    e_num, cmid = params['conv_b'].shape
    hw = h * w
    k = cin * 9
    c = num_classes
    ec = e_num * c
    ecm = e_num * cmid

    # --- inputs -------------------------------------------------------------
    patches = _im2col_3x3(x.astype(jnp.float32)).reshape(b * hw, k)  # [B*HW, K]
    onehot = jax.nn.one_hot(target, c, dtype=jnp.float32)            # [B, C]
    onehot_tiled = jnp.tile(onehot, (1, e_num))                      # [B, E*C]

    # --- fold experts into the lane dimension (PyTorch -> kernel layouts) ----
    # conv: [E, Cmid, Cin, 3, 3] -> [K, E*Cmid]
    cw_all = (params['conv_w'].reshape(e_num, cmid, k)
              .transpose(2, 0, 1).reshape(k, ecm))
    cb_all = params['conv_b'].reshape(1, ecm)
    # fc: block-diagonal [E*Cmid, E*C]
    fw_bd = jnp.zeros((ecm, ec), jnp.float32)
    for ei in range(e_num):
        fw_bd = fw_bd.at[ei * cmid:(ei + 1) * cmid,
                         ei * c:(ei + 1) * c].set(params['fc_w'][ei].T)
    fb_all = params['fc_b'].reshape(1, ec)

    # --- batch tiling (the only grid axis; safe to mark "parallel") ----------
    # At real batch sizes pick bt as a multiple of 8 so each patches tile stays
    # within scoped VMEM (esp. v7x's 64 MiB) and work shards across both TCs.
    bt = b
    n_bt = pl.cdiv(b, bt)

    # --- tiny 0/1 selector operands (reused by every tile) -------------------
    row_sample = jnp.arange(bt * hw, dtype=jnp.int32) // hw
    pool = ((row_sample[None, :] == jnp.arange(bt, dtype=jnp.int32)[:, None])
            .astype(jnp.float32)) * (1.0 / hw)                      # [bt, bt*HW]
    lane_expert = jnp.arange(ec, dtype=jnp.int32) // c
    gsum = (lane_expert[:, None] == lane_expert[None, :]).astype(jnp.float32)
    csel = ((jnp.arange(ec, dtype=jnp.int32)[:, None] % c)
            == jnp.arange(c, dtype=jnp.int32)[None, :]).astype(jnp.float32)

    logits_slab, mixture, ce = pl.pallas_call(
        _ie_kernel,
        grid=(n_bt,),
        in_specs=[
            pl.BlockSpec((bt * hw, k), lambda i: (i, 0)),      # patches tile
            pl.BlockSpec((bt, ec), lambda i: (i, 0)),          # tiled one-hot
            pl.BlockSpec((k, ecm), lambda i: (0, 0)),          # folded conv W
            pl.BlockSpec((1, ecm), lambda i: (0, 0)),          # folded conv b
            pl.BlockSpec((ecm, ec), lambda i: (0, 0)),         # block-diag FC W
            pl.BlockSpec((1, ec), lambda i: (0, 0)),           # FC b
            pl.BlockSpec((bt, bt * hw), lambda i: (0, 0)),     # GAP matrix
            pl.BlockSpec((ec, ec), lambda i: (0, 0)),          # same-expert sum
            pl.BlockSpec((ec, c), lambda i: (0, 0)),           # class selector
        ],
        out_specs=[
            pl.BlockSpec((bt, ec), lambda i: (i, 0)),          # logits slab
            pl.BlockSpec((bt, c), lambda i: (i, 0)),           # mixture_pred
            pl.BlockSpec((bt, 1), lambda i: (i, 0)),           # per-sample CE
        ],
        out_shape=[
            jax.ShapeDtypeStruct((b, ec), jnp.float32),
            jax.ShapeDtypeStruct((b, c), jnp.float32),
            jax.ShapeDtypeStruct((b, 1), jnp.float32),
        ],
        compiler_params=pltpu.CompilerParams(
            dimension_semantics=("parallel",)),                # disjoint writes
    )(patches, onehot_tiled, cw_all, cb_all, fw_bd, fb_all, pool, gsum, csel)

    # loss = sum_e mean_b CE_e  ==  mean_b (sum_e CE_e)
    loss = jnp.mean(ce)
    logits_all = logits_slab.reshape(b, e_num, c).transpose(1, 0, 2)  # [E,B,C]
    return loss, logits_all, mixture


# --------------------------- pure-JAX reference -----------------------------


def ie_forward_ref(x, target, params, num_classes):
    b, cin, h, w = x.shape
    e_num, cmid = params['conv_b'].shape
    patches = _im2col_3x3(x.astype(jnp.float32))
    onehot = jax.nn.one_hot(target, num_classes, dtype=jnp.float32)
    cw = params['conv_w'].reshape(e_num, cmid, cin * 9).transpose(0, 2, 1)
    fw = params['fc_w'].transpose(0, 2, 1)

    total_loss = 0.0
    mixture = jnp.zeros((b, num_classes), jnp.float32)
    logits_all = []
    for i in range(e_num):
        hh = jnp.maximum(
            jnp.einsum('bpk,kc->bpc', patches, cw[i]) + params['conv_b'][i], 0.0)
        pooled = jnp.mean(hh, axis=1)
        logits = pooled @ fw[i] + params['fc_b'][i]
        logits_all.append(logits)
        logp = jax.nn.log_softmax(logits, axis=1)
        total_loss = total_loss + jnp.mean(-jnp.sum(onehot * logp, axis=1))
        mixture = mixture + jax.nn.softmax(logits, axis=1)
    return total_loss, jnp.stack(logits_all), mixture


# --------------------------------- main -------------------------------------

if __name__ == "__main__":
    MODEL_NUM = 3
    NUM_CLASSES = 10           # -> get_depth(10) == 20 in the original module
    B, CIN, H, W = 2, 4, 16, 16
    CMID = 32
    _ = get_depth(NUM_CLASSES)  # kept for fidelity with the original module

    key = jax.random.PRNGKey(0)
    kx, kt, kp = jax.random.split(key, 3)
    x = jax.random.normal(kx, (B, CIN, H, W), jnp.float32)
    target = jax.random.randint(kt, (B,), 0, NUM_CLASSES, jnp.int32)
    params = init_ie_params(kp, MODEL_NUM, NUM_CLASSES, CIN, CMID)

    loss, logits_all, mixture = ie_forward(x, target, params,
                                           num_classes=NUM_CLASSES)
    jax.block_until_ready((loss, logits_all, mixture))

    loss_r, logits_r, mixture_r = ie_forward_ref(x, target, params, NUM_CLASSES)
    np.testing.assert_allclose(np.asarray(loss), np.asarray(loss_r),
                               rtol=1e-5, atol=1e-5)
    np.testing.assert_allclose(np.asarray(logits_all), np.asarray(logits_r),
                               rtol=1e-5, atol=1e-5)
    # Mixture tolerance deliberately loosened: kernel softmax uses the EUP
    # approximate reciprocal (pl.reciprocal(..., approx=True)) per perf review.
    np.testing.assert_allclose(np.asarray(mixture), np.asarray(mixture_r),
                               rtol=5e-3, atol=5e-3)

    print("KERNEL_OK")
</pallas_src>

<mosaic_0001>
module attributes {stable_mosaic.version = 11 : i64} {
  func.func @_ie_kernel(%arg0: i32, %arg1: memref<512x36xf32, #tpu.memory_space<vmem>>, %arg2: memref<2x30xf32, #tpu.memory_space<vmem>>, %arg3: memref<36x96xf32, #tpu.memory_space<vmem>>, %arg4: memref<1x96xf32, #tpu.memory_space<vmem>>, %arg5: memref<96x30xf32, #tpu.memory_space<vmem>>, %arg6: memref<1x30xf32, #tpu.memory_space<vmem>>, %arg7: memref<2x512xf32, #tpu.memory_space<vmem>>, %arg8: memref<30x30xf32, #tpu.memory_space<vmem>>, %arg9: memref<30x10xf32, #tpu.memory_space<vmem>>, %arg10: memref<2x30xf32, #tpu.memory_space<vmem>>, %arg11: memref<2x10xf32, #tpu.memory_space<vmem>>, %arg12: memref<2x1xf32, #tpu.memory_space<vmem>>) attributes {dimension_semantics = [#tpu.dimension_semantics<parallel>], iteration_bounds = array<i64: 1>, scalar_prefetch = 0 : i64, scratch_operands = 0 : i64, tpu.core_type = #tpu.core_type<tc>, window_params = [{transform_indices = @transform_0, window_bounds = array<i64: 512, 36>}, {transform_indices = @transform_1, window_bounds = array<i64: 2, 30>}, {pipeline_mode = #tpu.pipeline_mode<synchronous>, transform_indices = @transform_2, window_bounds = array<i64: 36, 96>}, {pipeline_mode = #tpu.pipeline_mode<synchronous>, transform_indices = @transform_3, window_bounds = array<i64: 1, 96>}, {pipeline_mode = #tpu.pipeline_mode<synchronous>, transform_indices = @transform_4, window_bounds = array<i64: 96, 30>}, {pipeline_mode = #tpu.pipeline_mode<synchronous>, transform_indices = @transform_5, window_bounds = array<i64: 1, 30>}, {pipeline_mode = #tpu.pipeline_mode<synchronous>, transform_indices = @transform_6, window_bounds = array<i64: 2, 512>}, {pipeline_mode = #tpu.pipeline_mode<synchronous>, transform_indices = @transform_7, window_bounds = array<i64: 30, 30>}, {pipeline_mode = #tpu.pipeline_mode<synchronous>, transform_indices = @transform_8, window_bounds = array<i64: 30, 10>}, {transform_indices = @transform_9, window_bounds = array<i64: 2, 30>}, {transform_indices = @transform_10, window_bounds = array<i64: 2, 10>}, {transform_indices = @transform_11, window_bounds = array<i64: 2, 1>}]} {
    %c0 = arith.constant 0 : index
    %c0_0 = arith.constant 0 : index
    %0 = vector.load %arg1[%c0, %c0_0] : memref<512x36xf32, #tpu.memory_space<vmem>>, vector<512x36xf32>
    %c0_1 = arith.constant 0 : index
    %c0_2 = arith.constant 0 : index
    %1 = vector.load %arg3[%c0_1, %c0_2] : memref<36x96xf32, #tpu.memory_space<vmem>>, vector<36x96xf32>
    %cst = arith.constant dense<0.000000e+00> : vector<512x96xf32>
    %2 = tpu.matmul %0, %1, %cst {dimension_numbers = #tpu.dot_dimension_numbers<[1], [0], [0], [1], [0, 0, 1, 1], [], []>} : vector<512x36xf32>, vector<36x96xf32>, vector<512x96xf32> -> vector<512x96xf32>
    %c0_3 = arith.constant 0 : index
    %c0_4 = arith.constant 0 : index
    %3 = vector.load %arg4[%c0_3, %c0_4] : memref<1x96xf32, #tpu.memory_space<vmem>>, vector<1x96xf32>
    %4 = vector.broadcast %3 : vector<1x96xf32> to vector<512x96xf32>
    %5 = arith.addf %2, %4 : vector<512x96xf32>
    %cst_5 = arith.constant 0.000000e+00 : f32
    %6 = vector.broadcast %cst_5 : f32 to vector<512x96xf32>
    %7 = arith.maximumf %5, %6 : vector<512x96xf32>
    %c0_6 = arith.constant 0 : index
    %c0_7 = arith.constant 0 : index
    %8 = vector.load %arg7[%c0_6, %c0_7] : memref<2x512xf32, #tpu.memory_space<vmem>>, vector<2x512xf32>
    %cst_8 = arith.constant dense<0.000000e+00> : vector<2x96xf32>
    %9 = tpu.matmul %8, %7, %cst_8 {dimension_numbers = #tpu.dot_dimension_numbers<[1], [0], [0], [1], [0, 0, 1, 1], [], []>} : vector<2x512xf32>, vector<512x96xf32>, vector<2x96xf32> -> vector<2x96xf32>
    %c0_9 = arith.constant 0 : index
    %c0_10 = arith.constant 0 : index
    %10 = vector.load %arg5[%c0_9, %c0_10] : memref<96x30xf32, #tpu.memory_space<vmem>>, vector<96x30xf32>
    %cst_11 = arith.constant dense<0.000000e+00> : vector<2x30xf32>
    %11 = tpu.matmul %9, %10, %cst_11 {dimension_numbers = #tpu.dot_dimension_numbers<[1], [0], [0], [1], [0, 0, 1, 1], [], []>} : vector<2x96xf32>, vector<96x30xf32>, vector<2x30xf32> -> vector<2x30xf32>
    %c0_12 = arith.constant 0 : index
    %c0_13 = arith.constant 0 : index
    %12 = vector.load %arg6[%c0_12, %c0_13] : memref<1x30xf32, #tpu.memory_space<vmem>>, vector<1x30xf32>
    %13 = vector.broadcast %12 : vector<1x30xf32> to vector<2x30xf32>
    %14 = arith.addf %11, %13 : vector<2x30xf32>
    %c0_14 = arith.constant 0 : index
    %c0_15 = arith.constant 0 : index
    %15 = vector.load %arg10[%c0_14, %c0_15] : memref<2x30xf32, #tpu.memory_space<vmem>>, vector<2x30xf32>
    tpu.vector_store %arg10[%c0_14, %c0_15], %14 {strides = array<i32>} : memref<2x30xf32, #tpu.memory_space<vmem>>, vector<2x30xf32>,
    %cst_16 = arith.constant dense<0xFF800000> : vector<2xf32>
    %16 = vector.multi_reduction <maximumf>, %14, %cst_16 [1] : vector<2x30xf32> to vector<2xf32>
    %17 = vector.shape_cast %16 : vector<2xf32> to vector<2x1xf32>
    %18 = vector.broadcast %17 : vector<2x1xf32> to vector<2x30xf32>
    %19 = arith.subf %14, %18 : vector<2x30xf32>
    %20 = math.exp %19 : vector<2x30xf32>
    %c0_17 = arith.constant 0 : index
    %c0_18 = arith.constant 0 : index
    %21 = vector.load %arg8[%c0_17, %c0_18] : memref<30x30xf32, #tpu.memory_space<vmem>>, vector<30x30xf32>
    %cst_19 = arith.constant dense<0.000000e+00> : vector<2x30xf32>
    %22 = tpu.matmul %20, %21, %cst_19 {dimension_numbers = #tpu.dot_dimension_numbers<[1], [0], [0], [1], [0, 0, 1, 1], [], []>} : vector<2x30xf32>, vector<30x30xf32>, vector<2x30xf32> -> vector<2x30xf32>
    %23 = tpu.reciprocal %22 {approx = true} : vector<2x30xf32> -> vector<2x30xf32>
    %24 = arith.mulf %20, %23 : vector<2x30xf32>
    %25 = math.log %22 : vector<2x30xf32>
    %26 = arith.subf %19, %25 : vector<2x30xf32>
    %c0_20 = arith.constant 0 : index
    %c0_21 = arith.constant 0 : index
    %27 = vector.load %arg9[%c0_20, %c0_21] : memref<30x10xf32, #tpu.memory_space<vmem>>, vector<30x10xf32>
    %cst_22 = arith.constant dense<0.000000e+00> : vector<2x10xf32>
    %28 = tpu.matmul %24, %27, %cst_22 {dimension_numbers = #tpu.dot_dimension_numbers<[1], [0], [0], [1], [0, 0, 1, 1], [], []>} : vector<2x30xf32>, vector<30x10xf32>, vector<2x10xf32> -> vector<2x10xf32>
    %c0_23 = arith.constant 0 : index
    %c0_24 = arith.constant 0 : index
    %29 = vector.load %arg11[%c0_23, %c0_24] : memref<2x10xf32, #tpu.memory_space<vmem>>, vector<2x10xf32>
    tpu.vector_store %arg11[%c0_23, %c0_24], %28 {strides = array<i32>} : memref<2x10xf32, #tpu.memory_space<vmem>>, vector<2x10xf32>,
    %c0_25 = arith.constant 0 : index
    %c0_26 = arith.constant 0 : index
    %30 = vector.load %arg2[%c0_25, %c0_26] : memref<2x30xf32, #tpu.memory_space<vmem>>, vector<2x30xf32>
    %31 = arith.mulf %30, %26 : vector<2x30xf32>
    %cst_27 = arith.constant dense<0.000000e+00> : vector<2xf32>
    %32 = vector.multi_reduction <add>, %31, %cst_27 [1] : vector<2x30xf32> to vector<2xf32>
    %33 = vector.shape_cast %32 : vector<2xf32> to vector<2x1xf32>
    %cst_28 = arith.constant 0.000000e+00 : f32
    %34 = vector.broadcast %cst_28 : f32 to vector<2x1xf32>
    %35 = arith.subf %34, %33 : vector<2x1xf32>
    %c0_29 = arith.constant 0 : index
    %c0_30 = arith.constant 0 : index
    %36 = vector.load %arg12[%c0_29, %c0_30] : memref<2x1xf32, #tpu.memory_space<vmem>>, vector<2x1xf32>
    tpu.vector_store %arg12[%c0_29, %c0_30], %35 {strides = array<i32>} : memref<2x1xf32, #tpu.memory_space<vmem>>, vector<2x1xf32>,
    return
  }
  func.func @transform_0(%arg0: i32) -> (i32, i32) {
    %c0_i32 = arith.constant 0 : i32
    %c0_i32_0 = arith.constant 0 : i32
    return %arg0, %c0_i32 : i32, i32
  }
  func.func @transform_1(%arg0: i32) -> (i32, i32) {
    %c0_i32 = arith.constant 0 : i32
    %c0_i32_0 = arith.constant 0 : i32
    return %arg0, %c0_i32 : i32, i32
  }
  func.func @transform_2(%arg0: i32) -> (i32, i32) {
    %c0_i32 = arith.constant 0 : i32
    %c0_i32_0 = arith.constant 0 : i32
    %c0_i32_1 = arith.constant 0 : i32
    return %c0_i32, %c0_i32_0 : i32, i32
  }
  func.func @transform_3(%arg0: i32) -> (i32, i32) {
    %c0_i32 = arith.constant 0 : i32
    %c0_i32_0 = arith.constant 0 : i32
    %c0_i32_1 = arith.constant 0 : i32
    return %c0_i32, %c0_i32_0 : i32, i32
  }
  func.func @transform_4(%arg0: i32) -> (i32, i32) {
    %c0_i32 = arith.constant 0 : i32
    %c0_i32_0 = arith.constant 0 : i32
    %c0_i32_1 = arith.constant 0 : i32
    return %c0_i32, %c0_i32_0 : i32, i32
  }
  func.func @transform_5(%arg0: i32) -> (i32, i32) {
    %c0_i32 = arith.constant 0 : i32
    %c0_i32_0 = arith.constant 0 : i32
    %c0_i32_1 = arith.constant 0 : i32
    return %c0_i32, %c0_i32_0 : i32, i32
  }
  func.func @transform_6(%arg0: i32) -> (i32, i32) {
    %c0_i32 = arith.constant 0 : i32
    %c0_i32_0 = arith.constant 0 : i32
    %c0_i32_1 = arith.constant 0 : i32
    return %c0_i32, %c0_i32_0 : i32, i32
  }
  func.func @transform_7(%arg0: i32) -> (i32, i32) {
    %c0_i32 = arith.constant 0 : i32
    %c0_i32_0 = arith.constant 0 : i32
    %c0_i32_1 = arith.constant 0 : i32
    return %c0_i32, %c0_i32_0 : i32, i32
  }
  func.func @transform_8(%arg0: i32) -> (i32, i32) {
    %c0_i32 = arith.constant 0 : i32
    %c0_i32_0 = arith.constant 0 : i32
    %c0_i32_1 = arith.constant 0 : i32
    return %c0_i32, %c0_i32_0 : i32, i32
  }
  func.func @transform_9(%arg0: i32) -> (i32, i32) {
    %c0_i32 = arith.constant 0 : i32
    %c0_i32_0 = arith.constant 0 : i32
    return %arg0, %c0_i32 : i32, i32
  }
  func.func @transform_10(%arg0: i32) -> (i32, i32) {
    %c0_i32 = arith.constant 0 : i32
    %c0_i32_0 = arith.constant 0 : i32
    return %arg0, %c0_i32 : i32, i32
  }
  func.func @transform_11(%arg0: i32) -> (i32, i32) {
    %c0_i32 = arith.constant 0 : i32
    %c0_i32_0 = arith.constant 0 : i32
    return %arg0, %c0_i32 : i32, i32
  }
}

</mosaic_0001>

<bundles_post_ra>
// kernel: tile.9
= control target key start
LH: loop header
LB: loop body
LE: loop exit
PB: predicated region body
PF: predicated region fallthrough
CT: control target
= control target key end

     0   :  { %s10_s10 = smov 3  ;;  %vm12_vm0 = vcmask 80896   ;;  %s22_s11 = smov 3  ;;  %vm19_vm1 = vcmask 244896   ;;  %vm26_vm2 = vcmask 162896   ;;  %s58_s0 = inlined_call_operand.vmem [shape: f32[2,3,10], index: 0, kind: input, shape index: {}]   ;;  %s59_s1 = inlined_call_operand.vmem [shape: f32[2,30], index: 1, kind: output, shape index: {}]  }
   0x1   :  { %v34_v0 = vld [vmem:[%s58_s0 + $0x4] sm:$0xf]  ;;  %v8_v1 = vld [vmem:[%s58_s0] sm:$0xf]  ;;  %s15_s0 = smov 3  ;;  %s37_s12 = smov 20  }
   0x2   :  { %7 = vst [vmem:[#allocation1 + $0x8] sm:$0xf] %v34_v0  ;;  %9 = vst [vmem:[#allocation1] sm:$0xf] %v8_v1  ;;  %s38_s13 = smov 10  }
   0x9   :  { %v16_v2 = vld [vmem:[#allocation1 + $0x2] ss:$8 sm:%s15_s0]   ;;  %v11_v3 = vld [vmem:[#allocation1] ss:$8 sm:%s10_s10]   ;;  %v23_v4 = vld [vmem:[#allocation1 + $0x1] ss:$8 sm:%s22_s11]  }
   0xa   :  { %17 = vrot.lane.b32.xlu0 %v16_v2, %s37_s12  ;;  %13 = vst.msk [vmem:[#allocation0] sm:$0x3] %vm12_vm0, %v11_v3  }
   0xe   :  { %24 = vrot.lane.b32.xlu0 %v23_v4, %s38_s13 }
  0x7c   :  { %v18_v5 = vpop.permute.xlu0 %17  }
  0x7d   :  { %20 = vst.msk [vmem:[#allocation0] sm:$0x3] %vm19_vm1, %v18_v5  }
  0x80   :  { %v25_v6 = vpop.permute.xlu0 %24  }
  0x81   :  { %27 = vst.msk [vmem:[#allocation0] sm:$0x3] %vm26_vm2, %v25_v6  }
  0x88   :  { %v31_v7 = vld [vmem:[#allocation0] sm:$0x3] }
  0x89   :  { %33 = vst [vmem:[%s59_s1] sm:$0x3] %v31_v7 }

// kernel: ie_forward.1
= control target key start
LH: loop header
LB: loop body
LE: loop exit
PB: predicated region body
PF: predicated region fallthrough
CT: control target
= control target key end

     0   :  { %vm112_vm0 = vcmask 293888   ;;  %vm305_vm1 = vcmask 1043456   ;;  %s2325_s0 = inlined_call_operand.vmem [shape: f32[512,36], index: 0, kind: input, shape index: {}]   ;;  %s2326_s1 = inlined_call_operand.vmem [shape: f32[2,30], index: 1, kind: input, shape index: {}]   ;;  %s2327_s2 = inlined_call_operand.vmem [shape: f32[36,96], index: 2, kind: input, shape index: {}]   ;;  %s2328_s3 = inlined_call_operand.vmem [shape: f32[1,96], index: 3, kind: input, shape index: {}]   ;;  %s2329_s4 = inlined_call_operand.vmem [shape: f32[96,30], index: 4, kind: input, shape index: {}]   ;;  %s2330_s5 = inlined_call_operand.vmem [shape: f32[1,30], index: 5, kind: input, shape index: {}]   ;;  %s2331_s6 = inlined_call_operand.vmem [shape: f32[2,512], index: 6, kind: input, shape index: {}]   ;;  %s2332_s7 = inlined_call_operand.vmem [shape: f32[30,30], index: 7, kind: input, shape index: {}]   ;;  %s2333_s8 = inlined_call_operand.vmem [shape: f32[30,10], index: 8, kind: input, shape index: {}]   ;;  %s2334_s9 = inlined_call_operand.vmem [shape: f32[2,30], index: 9, kind: output, shape index: {0}]   ;;  %s2335_s10 = inlined_call_operand.hbm [shape: f32[2,10], index: 10, kind: output, shape index: {1}]   ;;  %s2336_s11 = inlined_call_operand.vmem [shape: f32[2,1], index: 11, kind: output, shape index: {2}]  }
   0x1   :  { %v100_v0 = vld [vmem:[%s2327_s2] sm:$0xff]  ;;  %v101_v1 = vld [vmem:[%s2327_s2 + $0x8] sm:$0xff]  ;;  %v102_v2 = vld [vmem:[%s2327_s2 + $0x10] sm:$0xff] }
   0x2   :  { %v1610_v3 = vpack.c.bf16 %v101_v1, %v100_v0  ;;  %v103_v4 = vld [vmem:[%s2327_s2 + $0x18] sm:$0xff]  ;;  %v36_v5 = vld [vmem:[%s2325_s0] sm:$0xff]  ;;  %v37_v8 = vld [vmem:[%s2325_s0 + $0x8] sm:$0xff] }
   0x3   :  { %v1614_v6 = vpack.c.bf16 %v103_v4, %v102_v2  ;;  %1465 = vmatprep.mubr.msk.f32.mxu0 %vm112_vm0, %v36_v5  ;;  %v104_v7 = vld [vmem:[%s2327_s2 + $0x20] sm:$0xf]  ;;  %v38_v9 = vld [vmem:[%s2325_s0 + $0x10] sm:$0xff]  ;;  %v39_v10 = vld [vmem:[%s2325_s0 + $0x18] sm:$0xff] }
   0x4   :  { %1611 = vmatprep.subr.bf16.mxu0 %v1610_v3  ;;  %v40_v11 = vld [vmem:[%s2325_s0 + $0x20] sm:$0xff]  ;;  %v41_v12 = vld [vmem:[%s2325_s0 + $0x28] sm:$0xff]  ;;  %v42_v13 = vld [vmem:[%s2325_s0 + $0x30] sm:$0xff] }
   0x5   :  { %1613 = vmatpush3.bf16.msra.mxu0 %v1610_v3  ;;  %v43_v14 = vld [vmem:[%s2325_s0 + $0x38] sm:$0xff]  ;;  %v44_v15 = vld [vmem:[%s2325_s0 + $0x40] sm:$0xff] }
   0x6   :  { %1615 = vmatprep.subr.bf16.mxu0 %v1614_v6 }
   0x9   :  { %1617 = vmatpush3.bf16.msra.mxu0 %v1614_v6 }
   0xa   :  { %1463 = vmatprep.subr.msk.mxu0 %vm305_vm1, %v104_v7 }
   0xd   :  { %1464 = vmatpush3.msk.msra.mxu0 %vm305_vm1, %v104_v7 }
   0xe   :  { %1466 = vmatmul.mubr.msk.f32.vlgmr.msra.gmra.mrb[0].mxu0 %vm112_vm0, %v37_v8 }
   0xf   :  { %1468 = vmatprep.mubr.msk.f32.mxu0 %vm112_vm0, %v38_v9 }
  0x12   :  { %1469 = vmatmul.mubr.msk.f32.gmra.mrb[2].mxu0 %vm112_vm0, %v39_v10 }
  0x13   :  { %1471 = vmatprep.mubr.msk.f32.mxu0 %vm112_vm0, %v40_v11 }
  0x16   :  { %1472 = vmatmul.mubr.msk.f32.gmra.mrb[4].mxu0 %vm112_vm0, %v41_v12 }
  0x17   :  { %1474 = vmatprep.mubr.msk.f32.mxu0 %vm112_vm0, %v42_v13 }
  0x18   :  { %17 = vsyncpa [#allocation3], 0  ;;  %v45_v16 = vld [vmem:[%s2325_s0 + $0x48] sm:$0xff]  ;;  %v46_v17 = vld [vmem:[%s2325_s0 + $0x50] sm:$0xff]  ;;  %v1751_v7 = vmov 1983009808   ;;  %v764_v9 = vlaneseq }
  0x19   :  { %v47_v18 = vld [vmem:[%s2325_s0 + $0x58] sm:$0xff]  ;;  %v48_v19 = vld [vmem:[%s2325_s0 + $0x60] sm:$0xff]  ;;  %v49_v20 = vld [vmem:[%s2325_s0 + $0x68] sm:$0xff]  ;;  %v762_v8 = vunpack.c.l.s4 %v1751_v7  ;;  %vm1753_vm2 = vmmov 0   ;;  %vm940_vm3 = vcmask 785408   ;;  %vm1014_vm4 = vcmask 238592  }
  0x1a   :  { %1475 = vmatmul.mubr.msk.f32.gmra.mrb[6].mxu0 %vm112_vm0, %v43_v14  ;;  %v50_v21 = vld [vmem:[%s2325_s0 + $0x70] sm:$0xff]  ;;  %v51_v22 = vld [vmem:[%s2325_s0 + $0x78] sm:$0xff]  ;;  %v52_v23 = vld [vmem:[%s2325_s0 + $0x80] sm:$0xff]  ;;  %v765_v11 = vshrl.u32 %v764_v9, 7  ;;  %vm1030_vm5 = vcmask 1045504   ;;  %vm1755_vm6 = vmmov 1  }
  0x1b   :  { %1477 = vmatprep.mubr.msk.f32.mxu0 %vm112_vm0, %v44_v15  ;;  %v53_v24 = vld [vmem:[%s2325_s0 + $0x88] sm:$0xff]  ;;  %v54_v25 = vld [vmem:[%s2325_s0 + $0x90] sm:$0xff]  ;;  %v55_v26 = vld [vmem:[%s2325_s0 + $0x98] sm:$0xff]  ;;  %v763_v10 = vunpack.c.0.s8 %v762_v8  ;;  %vm1026_vm8 = vcmask 244736   ;;  %vm1197_vm9 = vcmask 1024   ;;  %s1756_s16 = smov [#allocation2]  }
  0x1c   :  { %v56_v27 = vld [vmem:[%s2325_s0 + $0xa0] sm:$0xff]  ;;  %v57_v28 = vld [vmem:[%s2325_s0 + $0xa8] sm:$0xff]  ;;  %v58_v29 = vld [vmem:[%s2325_s0 + $0xb0] sm:$0xff]  ;;  %s1207_s17 = sshll.u32 %s1756_s16, 4  ;;  %vm1189_vm10 = vcmask 74752   ;;  %s1208_s17 = int_to_ptr.vmem [resolvable:$true] %s1207_s17 }
  0x1d   :  { %v59_v30 = vld [vmem:[%s2325_s0 + $0xb8] sm:$0xff]  ;;  %v60_v31 = vld [vmem:[%s2325_s0 + $0xc0] sm:$0xff]  ;;  %v61_v32 = vld [vmem:[%s2325_s0 + $0xc8] sm:$0xff]  ;;  %v766_v12 = vsub.s32 %v763_v10, %v765_v11  ;;  %p1732_p1 = scmp.lt.s32.totalorder %s1208_s17, %s1208_s17 }
  0x1e   :  { %1478 = vmatmul.mubr.msk.f32.gmra.mrb[8].mxu0 %vm112_vm0, %v45_v16  ;;  %v62_v33 = vld [vmem:[%s2325_s0 + $0xd0] sm:$0xff]  ;;  %v63_v34 = vld [vmem:[%s2325_s0 + $0xd8] sm:$0xff]  ;;  %v64_v35 = vld [vmem:[%s2325_s0 + $0xe0] sm:$0xff] }
  0x1f   :  { %1480 = vmatprep.mubr.msk.f32.mxu0 %vm112_vm0, %v46_v17  ;;  %v65_v36 = vld [vmem:[%s2325_s0 + $0xe8] sm:$0xff]  ;;  %v66_v37 = vld [vmem:[%s2325_s0 + $0xf0] sm:$0xff]  ;;  %v67_v38 = vld [vmem:[%s2325_s0 + $0xf8] sm:$0xff] }
  0x20   :  { %v68_v39 = vld [vmem:[%s2325_s0 + $0x100] sm:$0xff]  ;;  %v69_v40 = vld [vmem:[%s2325_s0 + $0x108] sm:$0xff]  ;;  %v70_v41 = vld [vmem:[%s2325_s0 + $0x110] sm:$0xff] }
  0x21   :  { %v71_v42 = vld [vmem:[%s2325_s0 + $0x118] sm:$0xff]  ;;  %v72_v43 = vld [vmem:[%s2325_s0 + $0x120] sm:$0xff]  ;;  %v73_v44 = vld [vmem:[%s2325_s0 + $0x128] sm:$0xff] }
  0x22   :  { %1481 = vmatmul.mubr.msk.f32.gmra.mrb[10].mxu0 %vm112_vm0, %v47_v18  ;;  %v74_v45 = vld [vmem:[%s2325_s0 + $0x130] sm:$0xff]  ;;  %v75_v46 = vld [vmem:[%s2325_s0 + $0x138] sm:$0xff]  ;;  %v76_v47 = vld [vmem:[%s2325_s0 + $0x140] sm:$0xff] }
  0x23   :  { %1483 = vmatprep.mubr.msk.f32.mxu0 %vm112_vm0, %v48_v19  ;;  %v77_v48 = vld [vmem:[%s2325_s0 + $0x148] sm:$0xff]  ;;  %v78_v49 = vld [vmem:[%s2325_s0 + $0x150] sm:$0xff]  ;;  %v79_v50 = vld [vmem:[%s2325_s0 + $0x158] sm:$0xff] }
  0x24   :  { %v80_v51 = vld [vmem:[%s2325_s0 + $0x160] sm:$0xff]  ;;  %v81_v52 = vld [vmem:[%s2325_s0 + $0x168] sm:$0xff]  ;;  %v82_v53 = vld [vmem:[%s2325_s0 + $0x170] sm:$0xff] }
  0x25   :  { %v83_v54 = vld [vmem:[%s2325_s0 + $0x178] sm:$0xff]  ;;  %v84_v55 = vld [vmem:[%s2325_s0 + $0x180] sm:$0xff]  ;;  %v85_v56 = vld [vmem:[%s2325_s0 + $0x188] sm:$0xff] }
  0x26   :  { %1484 = vmatmul.mubr.msk.f32.gmra.mrb[12].mxu0 %vm112_vm0, %v49_v20  ;;  %v86_v57 = vld [vmem:[%s2325_s0 + $0x190] sm:$0xff]  ;;  %v87_v58 = vld [vmem:[%s2325_s0 + $0x198] sm:$0xff]  ;;  %v88_v59 = vld [vmem:[%s2325_s0 + $0x1a0] sm:$0xff] }
  0x27   :  { %1486 = vmatprep.mubr.msk.f32.mxu0 %vm112_vm0, %v50_v21  ;;  %v89_v60 = vld [vmem:[%s2325_s0 + $0x1a8] sm:$0xff]  ;;  %v90_v61 = vld [vmem:[%s2325_s0 + $0x1b0] sm:$0xff]  ;;  %v91_v62 = vld [vmem:[%s2325_s0 + $0x1b8] sm:$0xff] }
  0x28   :  { %v92_v63 = vld [vmem:[%s2325_s0 + $0x1c0] sm:$0xff]  ;;  %v93_v0 = vld [vmem:[%s2325_s0 + $0x1c8] sm:$0xff]  ;;  %v94_v1 = vld [vmem:[%s2325_s0 + $0x1d0] sm:$0xff] }
  0x29   :  { %v95_v2 = vld [vmem:[%s2325_s0 + $0x1d8] sm:$0xff]  ;;  %v96_v3 = vld [vmem:[%s2325_s0 + $0x1e0] sm:$0xff]  ;;  %v97_v4 = vld [vmem:[%s2325_s0 + $0x1e8] sm:$0xff] }
  0x2a   :  { %1487 = vmatmul.mubr.msk.f32.gmra.mrb[14].mxu0 %vm112_vm0, %v51_v22  ;;  %v98_v5 = vld [vmem:[%s2325_s0 + $0x1f0] sm:$0xff]  ;;  %v99_v6 = vld [vmem:[%s2325_s0 + $0x1f8] sm:$0xff]  ;;  %v758_v13 = vld [vmem:[%s2331_s6] sm:$0xff] }
  0x2b   :  { %1489 = vmatprep.mubr.msk.f32.mxu0 %vm112_vm0, %v52_v23  ;;  %v2091_v14 = vrot.slane %v758_v13, %v766_v12  ;;  %v2098_v16 = vld [vmem:[%s2328_s3] ss:$0 sm:$0xff]  ;;  %v760_v17 = vcombine.high %v758_v13, %v758_v13  ;;  %vm2281_vm7 = vmpackc.low %vm1030_vm5, %vm1755_vm6 }
  0x2d   :  { %v775_v15 = vcombine.high %v2091_v14, %v2091_v14  ;;  %v2102_v23 = vrot.slane %v760_v17, %v766_v12 }
  0x2e   :  { %1490 = vmatmul.mubr.msk.f32.gmra.mrb[16].mxu0 %vm112_vm0, %v53_v24 }
  0x2f   :  { %1492 = vmatprep.mubr.msk.f32.mxu0 %vm112_vm0, %v54_v25  ;;  %845 = vmatprep.mubr.f32.mxu1 %v775_v15 }
  0x32   :  { %1493 = vmatmul.mubr.msk.f32.gmra.mrb[18].mxu0 %vm112_vm0, %v55_v26 }
  0x33   :  { %1495 = vmatprep.mubr.msk.f32.mxu0 %vm112_vm0, %v56_v27 }
  0x36   :  { %1496 = vmatmul.mubr.msk.f32.gmra.mrb[20].mxu0 %vm112_vm0, %v57_v28 }
  0x37   :  { %1498 = vmatprep.mubr.msk.f32.mxu0 %vm112_vm0, %v58_v29 }
  0x3a   :  { %1499 = vmatmul.mubr.msk.f32.gmra.mrb[22].mxu0 %vm112_vm0, %v59_v30 }
  0x3b   :  { %1501 = vmatprep.mubr.msk.f32.mxu0 %vm112_vm0, %v60_v31 }
  0x3e   :  { %1502 = vmatmul.mubr.msk.f32.gmra.mrb[24].mxu0 %vm112_vm0, %v61_v32 }
  0x3f   :  { %1504 = vmatprep.mubr.msk.f32.mxu0 %vm112_vm0, %v62_v33 }
  0x42   :  { %1505 = vmatmul.mubr.msk.f32.gmra.mrb[26].mxu0 %vm112_vm0, %v63_v34 }
  0x43   :  { %1507 = vmatprep.mubr.msk.f32.mxu0 %vm112_vm0, %v64_v35 }
  0x46   :  { %1508 = vmatmul.mubr.msk.f32.gmra.mrb[28].mxu0 %vm112_vm0, %v65_v36 }
  0x47   :  { %1510 = vmatprep.mubr.msk.f32.mxu0 %vm112_vm0, %v66_v37 }
  0x4a   :  { %1511 = vmatmul.mubr.msk.f32.gmra.mrb[30].mxu0 %vm112_vm0, %v67_v38 }
  0x4b   :  { %1513 = vmatprep.mubr.msk.f32.mxu0 %vm112_vm0, %v68_v39 }
  0x4e   :  { %1514 = vmatmul.mubr.msk.f32.gmra.mrb[32].mxu0 %vm112_vm0, %v69_v40 }
  0x4f   :  { %1516 = vmatprep.mubr.msk.f32.mxu0 %vm112_vm0, %v70_v41 }
  0x52   :  { %1517 = vmatmul.mubr.msk.f32.gmra.mrb[34].mxu0 %vm112_vm0, %v71_v42 }
  0x53   :  { %1519 = vmatprep.mubr.msk.f32.mxu0 %vm112_vm0, %v72_v43 }
  0x56   :  { %1520 = vmatmul.mubr.msk.f32.gmra.mrb[36].mxu0 %vm112_vm0, %v73_v44 }
  0x57   :  { %1522 = vmatprep.mubr.msk.f32.mxu0 %vm112_vm0, %v74_v45 }
  0x5a   :  { %1523 = vmatmul.mubr.msk.f32.gmra.mrb[38].mxu0 %vm112_vm0, %v75_v46 }
  0x5b   :  { %1525 = vmatprep.mubr.msk.f32.mxu0 %vm112_vm0, %v76_v47 }
  0x5e   :  { %1526 = vmatmul.mubr.msk.f32.gmra.mrb[40].mxu0 %vm112_vm0, %v77_v48 }
  0x5f   :  { %1528 = vmatprep.mubr.msk.f32.mxu0 %vm112_vm0, %v78_v49 }
  0x62   :  { %1529 = vmatmul.mubr.msk.f32.gmra.mrb[42].mxu0 %vm112_vm0, %v79_v50 }
  0x63   :  { %1531 = vmatprep.mubr.msk.f32.mxu0 %vm112_vm0, %v80_v51 }
  0x66   :  { %1532 = vmatmul.mubr.msk.f32.gmra.mrb[44].mxu0 %vm112_vm0, %v81_v52 }
  0x67   :  { %1534 = vmatprep.mubr.msk.f32.mxu0 %vm112_vm0, %v82_v53 }
  0x6a   :  { %1535 = vmatmul.mubr.msk.f32.gmra.mrb[46].mxu0 %vm112_vm0, %v83_v54 }
  0x6b   :  { %1537 = vmatprep.mubr.msk.f32.mxu0 %vm112_vm0, %v84_v55 }
  0x6e   :  { %1538 = vmatmul.mubr.msk.f32.gmra.mrb[48].mxu0 %vm112_vm0, %v85_v56 }
  0x6f   :  { %1540 = vmatprep.mubr.msk.f32.mxu0 %vm112_vm0, %v86_v57 }
  0x72   :  { %1541 = vmatmul.mubr.msk.f32.gmra.mrb[50].mxu0 %vm112_vm0, %v87_v58 }
  0x73   :  { %1543 = vmatprep.mubr.msk.f32.mxu0 %vm112_vm0, %v88_v59 }
  0x76   :  { %1544 = vmatmul.mubr.msk.f32.gmra.mrb[52].mxu0 %vm112_vm0, %v89_v60 }
  0x77   :  { %1546 = vmatprep.mubr.msk.f32.mxu0 %vm112_vm0, %v90_v61 }
  0x7a   :  { %1547 = vmatmul.mubr.msk.f32.gmra.mrb[54].mxu0 %vm112_vm0, %v91_v62 }
  0x7b   :  { %1549 = vmatprep.mubr.msk.f32.mxu0 %vm112_vm0, %v92_v63 }
  0x7e   :  { %1550 = vmatmul.mubr.msk.f32.gmra.mrb[56].mxu0 %vm112_vm0, %v93_v0 }
  0x7f   :  { %1552 = vmatprep.mubr.msk.f32.mxu0 %vm112_vm0, %v94_v1 }
  0x82   :  { %1553 = vmatmul.mubr.msk.f32.gmra.mrb[58].mxu0 %vm112_vm0, %v95_v2 }
  0x83   :  { %1555 = vmatprep.mubr.msk.f32.mxu0 %vm112_vm0, %v96_v3 }
  0x86   :  { %1556 = vmatmul.mubr.msk.f32.gmra.mrb[60].mxu0 %vm112_vm0, %v97_v4 }
  0x87   :  { %1558 = vmatprep.mubr.msk.f32.mxu0 %vm112_vm0, %v98_v5 }
  0x8a   :  { %1559 = vmatmul.mubr.msk.f32.gmra.mrb[62].mxu0 %vm112_vm0, %v99_v6 }
  0xe1   :  { %v1467_v18 = vpop.f32.mrb[0].mxu0 }
  0xe2   :  { %v381_v19 = vadd.f32 %v1467_v18, %v2098_v16  ;;  %v375_v20 = vpop.f32.mrb[1].mxu0 }
  0xe3   :  { %v376_v21 = vadd.f32 %v2098_v16, %v375_v20 }
  0xe4   :  { %v695_v22 = vmax.f32 %v381_v19, 0.0 }
  0xe5   :  { %v694_v24 = vmax.f32 %v376_v21, 0.0  ;;  %v1470_v25 = vpop.f32.mrb[2].mxu0 }
  0xe6   :  { %v391_v26 = vadd.f32 %v1470_v25, %v2098_v16  ;;  %v385_v27 = vpop.f32.mrb[3].mxu0 }
  0xe7   :  { %v386_v28 = vadd.f32 %v2098_v16, %v385_v27  ;;  %v1620_v29 = vpack.c.bf16 %v695_v22, %v694_v24 }
  0xe8   :  { %v697_v30 = vmax.f32 %v391_v26, 0.0 }
  0xe9   :  { %v696_v31 = vmax.f32 %v386_v28, 0.0  ;;  %v1473_v32 = vpop.f32.mrb[4].mxu0 }
  0xea   :  { %v401_v33 = vadd.f32 %v1473_v32, %v2098_v16  ;;  %v395_v34 = vpop.f32.mrb[5].mxu0 }
  0xeb   :  { %v2107_v35 = vpack.c.bf16 %v697_v30, %v696_v31  ;;  %v396_v36 = vadd.f32 %v2098_v16, %v395_v34 }
  0xec   :  { %v699_v37 = vmax.f32 %v401_v33, 0.0 }
  0xed   :  { %v698_v38 = vmax.f32 %v396_v36, 0.0  ;;  %v1476_v39 = vpop.f32.mrb[6].mxu0 }
  0xee   :  { %v411_v40 = vadd.f32 %v1476_v39, %v2098_v16  ;;  %v405_v41 = vpop.f32.mrb[7].mxu0 }
  0xef   :  { %v2111_v42 = vpack.c.bf16 %v699_v37, %v698_v38  ;;  %v406_v43 = vadd.f32 %v2098_v16, %v405_v41 }
  0xf0   :  { %v701_v44 = vmax.f32 %v411_v40, 0.0 }
  0xf1   :  { %v700_v45 = vmax.f32 %v406_v43, 0.0  ;;  %v1479_v46 = vpop.f32.mrb[8].mxu0 }
  0xf2   :  { %v421_v47 = vadd.f32 %v1479_v46, %v2098_v16  ;;  %v415_v48 = vpop.f32.mrb[9].mxu0 }
  0xf3   :  { %v2115_v49 = vpack.c.bf16 %v701_v44, %v700_v45  ;;  %v416_v50 = vadd.f32 %v2098_v16, %v415_v48 }
  0xf4   :  { %v703_v51 = vmax.f32 %v421_v47, 0.0 }
  0xf5   :  { %v702_v52 = vmax.f32 %v416_v50, 0.0  ;;  %v1482_v53 = vpop.f32.mrb[10].mxu0 }
  0xf6   :  { %v431_v54 = vadd.f32 %v1482_v53, %v2098_v16  ;;  %v425_v55 = vpop.f32.mrb[11].mxu0 }
  0xf7   :  { %v2119_v56 = vpack.c.bf16 %v703_v51, %v702_v52  ;;  %v426_v57 = vadd.f32 %v2098_v16, %v425_v55 }
  0xf8   :  { %v705_v58 = vmax.f32 %v431_v54, 0.0 }
  0xf9   :  { %v704_v59 = vmax.f32 %v426_v57, 0.0  ;;  %v1485_v60 = vpop.f32.mrb[12].mxu0 }
  0xfa   :  { %v441_v61 = vadd.f32 %v1485_v60, %v2098_v16  ;;  %v435_v62 = vpop.f32.mrb[13].mxu0 }
  0xfb   :  { %v2123_v63 = vpack.c.bf16 %v705_v58, %v704_v59  ;;  %v436_v0 = vadd.f32 %v2098_v16, %v435_v62 }
  0xfc   :  { %v707_v1 = vmax.f32 %v441_v61, 0.0 }
  0xfd   :  { %v706_v2 = vmax.f32 %v436_v0, 0.0  ;;  %v1488_v3 = vpop.f32.mrb[14].mxu0 }
  0xfe   :  { %v451_v4 = vadd.f32 %v1488_v3, %v2098_v16  ;;  %v445_v5 = vpop.f32.mrb[15].mxu0 }
  0xff   :  { %v2127_v6 = vpack.c.bf16 %v707_v1, %v706_v2  ;;  %v446_v7 = vadd.f32 %v2098_v16, %v445_v5 }
 0x100   :  { %v709_v8 = vmax.f32 %v451_v4, 0.0 }
 0x101   :  { %v708_v9 = vmax.f32 %v446_v7, 0.0  ;;  %v1491_v10 = vpop.f32.mrb[16].mxu0 }
 0x102   :  { %v461_v11 = vadd.f32 %v1491_v10, %v2098_v16  ;;  %v455_v12 = vpop.f32.mrb[17].mxu0 }
 0x103   :  { %v2131_v13 = vpack.c.bf16 %v709_v8, %v708_v9  ;;  %v456_v15 = vadd.f32 %v2098_v16, %v455_v12 }
 0x104   :  { %v711_v17 = vmax.f32 %v461_v11, 0.0 }
 0x105   :  { %v710_v18 = vmax.f32 %v456_v15, 0.0  ;;  %v1494_v19 = vpop.f32.mrb[18].mxu0 }
 0x106   :  { %v471_v20 = vadd.f32 %v1494_v19, %v2098_v16  ;;  %v465_v21 = vpop.f32.mrb[19].mxu0  ;;  %v776_v19 = vcombine.high %v2102_v23, %v2102_v23 }
 0x107   :  { %v466_v22 = vadd.f32 %v2098_v16, %v465_v21  ;;  %v1618_v24 = vpack.c.bf16 %v711_v17, %v710_v18 }
 0x108   :  { %v713_v25 = vmax.f32 %v471_v20, 0.0 }
 0x109   :  { %v712_v26 = vmax.f32 %v466_v22, 0.0  ;;  %v1497_v27 = vpop.f32.mrb[20].mxu0  ;;  %1619 = vmatprep.subr.bf16.mxu1 %v1618_v24 }
 0x10a   :  { %v481_v28 = vadd.f32 %v1497_v27, %v2098_v16  ;;  %v475_v30 = vpop.f32.mrb[21].mxu0  ;;  %1621 = vmatpush3.bf16.msra.mxu1 %v1620_v29 }
 0x10b   :  { %v1622_v31 = vpack.c.bf16 %v713_v25, %v712_v26  ;;  %v476_v32 = vadd.f32 %v2098_v16, %v475_v30 }
 0x10c   :  { %v715_v33 = vmax.f32 %v481_v28, 0.0 }
 0x10d   :  { %v714_v34 = vmax.f32 %v476_v32, 0.0  ;;  %v1500_v36 = vpop.f32.mrb[22].mxu0  ;;  %1623 = vmatprep.subr.bf16.mxu1 %v1622_v31 }
 0x10e   :  { %v491_v37 = vadd.f32 %v1500_v36, %v2098_v16  ;;  %v485_v38 = vpop.f32.mrb[23].mxu0  ;;  %1625 = vmatpush3.bf16.msra.mxu1 %v2107_v35 }
 0x10f   :  { %v1626_v39 = vpack.c.bf16 %v715_v33, %v714_v34  ;;  %v486_v40 = vadd.f32 %v2098_v16, %v485_v38 }
 0x110   :  { %v717_v41 = vmax.f32 %v491_v37, 0.0 }
 0x111   :  { %v716_v43 = vmax.f32 %v486_v40, 0.0  ;;  %v1503_v44 = vpop.f32.mrb[24].mxu0  ;;  %1627 = vmatprep.subr.bf16.mxu1 %v1626_v39 }
 0x112   :  { %v501_v29 = vadd.f32 %v1503_v44, %v2098_v16  ;;  %v495_v45 = vpop.f32.mrb[25].mxu0  ;;  %1629 = vmatpush3.bf16.msra.mxu1 %v2111_v42 }
 0x113   :  { %v1630_v46 = vpack.c.bf16 %v717_v41, %v716_v43  ;;  %v496_v47 = vadd.f32 %v2098_v16, %v495_v45 }
 0x114   :  { %v719_v48 = vmax.f32 %v501_v29, 0.0 }
 0x115   :  { %v718_v50 = vmax.f32 %v496_v47, 0.0  ;;  %v1506_v51 = vpop.f32.mrb[26].mxu0  ;;  %1631 = vmatprep.subr.bf16.mxu1 %v1630_v46 }
 0x116   :  { %v511_v35 = vadd.f32 %v1506_v51, %v2098_v16  ;;  %v505_v52 = vpop.f32.mrb[27].mxu0  ;;  %1633 = vmatpush3.bf16.msra.mxu1 %v2115_v49 }
 0x117   :  { %v1634_v53 = vpack.c.bf16 %v719_v48, %v718_v50  ;;  %v506_v54 = vadd.f32 %v2098_v16, %v505_v52 }
 0x118   :  { %v721_v55 = vmax.f32 %v511_v35, 0.0 }
 0x119   :  { %v720_v57 = vmax.f32 %v506_v54, 0.0  ;;  %v1509_v58 = vpop.f32.mrb[28].mxu0  ;;  %1635 = vmatprep.subr.bf16.mxu1 %v1634_v53 }
 0x11a   :  { %v521_v42 = vadd.f32 %v1509_v58, %v2098_v16  ;;  %v515_v59 = vpop.f32.mrb[29].mxu0  ;;  %1637 = vmatpush3.bf16.msra.mxu1 %v2119_v56 }
 0x11b   :  { %v1638_v60 = vpack.c.bf16 %v721_v55, %v720_v57  ;;  %v516_v61 = vadd.f32 %v2098_v16, %v515_v59 }
 0x11c   :  { %v723_v62 = vmax.f32 %v521_v42, 0.0 }
 0x11d   :  { %v722_v0 = vmax.f32 %v516_v61, 0.0  ;;  %v1512_v1 = vpop.f32.mrb[30].mxu0  ;;  %1639 = vmatprep.subr.bf16.mxu1 %v1638_v60 }
 0x11e   :  { %v531_v49 = vadd.f32 %v1512_v1, %v2098_v16  ;;  %v525_v2 = vpop.f32.mrb[31].mxu0  ;;  %1641 = vmatpush3.bf16.msra.mxu1 %v2123_v63 }
 0x11f   :  { %v1642_v3 = vpack.c.bf16 %v723_v62, %v722_v0  ;;  %v526_v4 = vadd.f32 %v2098_v16, %v525_v2 }
 0x120   :  { %v725_v5 = vmax.f32 %v531_v49, 0.0 }
 0x121   :  { %v724_v7 = vmax.f32 %v526_v4, 0.0  ;;  %v1515_v8 = vpop.f32.mrb[32].mxu0  ;;  %1643 = vmatprep.subr.bf16.mxu1 %v1642_v3 }
 0x122   :  { %v541_v56 = vadd.f32 %v1515_v8, %v2098_v16  ;;  %v535_v9 = vpop.f32.mrb[33].mxu0  ;;  %1645 = vmatpush3.bf16.msra.mxu1 %v2127_v6 }
 0x123   :  { %v1646_v10 = vpack.c.bf16 %v725_v5, %v724_v7  ;;  %v536_v11 = vadd.f32 %v2098_v16, %v535_v9 }
 0x124   :  { %v727_v12 = vmax.f32 %v541_v56, 0.0 }
 0x125   :  { %v726_v15 = vmax.f32 %v536_v11, 0.0  ;;  %v1518_v17 = vpop.f32.mrb[34].mxu0  ;;  %1647 = vmatprep.subr.bf16.mxu1 %v1646_v10 }
 0x126   :  { %v551_v63 = vadd.f32 %v1518_v17, %v2098_v16  ;;  %v545_v18 = vpop.f32.mrb[35].mxu0  ;;  %1649 = vmatpush3.bf16.msra.mxu1 %v2131_v13 }
 0x127   :  { %v2160_v20 = vpack.c.bf16 %v727_v12, %v726_v15  ;;  %v546_v21 = vadd.f32 %v2098_v16, %v545_v18 }
 0x128   :  { %v729_v6 = vmax.f32 %v551_v63, 0.0 }
 0x129   :  { %v728_v22 = vmax.f32 %v546_v21, 0.0  ;;  %v1521_v24 = vpop.f32.mrb[36].mxu0  ;;  %846 = vmatmul.mubr.f32.vlgmr.msra.gmra.mrb[0].mxu1 %v2091_v14 }
 0x12a   :  { %v561_v25 = vadd.f32 %v1521_v24, %v2098_v16  ;;  %v555_v26 = vpop.f32.mrb[37].mxu0  ;;  %915 = vmatprep.mubr.f32.mxu1 %v776_v19 }
 0x12b   :  { %v2165_v27 = vpack.c.bf16 %v729_v6, %v728_v22  ;;  %v556_v13 = vadd.f32 %v2098_v16, %v555_v26 }
 0x12c   :  { %v731_v28 = vmax.f32 %v561_v25, 0.0 }
 0x12d   :  { %v730_v30 = vmax.f32 %v556_v13, 0.0  ;;  %v1524_v31 = vpop.f32.mrb[38].mxu0 }
 0x12e   :  { %v571_v32 = vadd.f32 %v1524_v31, %v2098_v16  ;;  %v565_v33 = vpop.f32.mrb[39].mxu0 }
 0x12f   :  { %v2169_v34 = vpack.c.bf16 %v731_v28, %v730_v30  ;;  %v566_v36 = vadd.f32 %v2098_v16, %v565_v33 }
 0x130   :  { %v733_v37 = vmax.f32 %v571_v32, 0.0 }
 0x131   :  { %v732_v14 = vmax.f32 %v566_v36, 0.0  ;;  %v1527_v38 = vpop.f32.mrb[40].mxu0 }
 0x132   :  { %v581_v39 = vadd.f32 %v1527_v38, %v2098_v16  ;;  %v575_v40 = vpop.f32.mrb[41].mxu0 }
 0x133   :  { %v2173_v41 = vpack.c.bf16 %v733_v37, %v732_v14  ;;  %v576_v43 = vadd.f32 %v2098_v16, %v575_v40 }
 0x134   :  { %v735_v44 = vmax.f32 %v581_v39, 0.0 }
 0x135   :  { %v734_v29 = vmax.f32 %v576_v43, 0.0  ;;  %v1530_v45 = vpop.f32.mrb[42].mxu0 }
 0x136   :  { %v591_v46 = vadd.f32 %v1530_v45, %v2098_v16  ;;  %v585_v47 = vpop.f32.mrb[43].mxu0 }
 0x137   :  { %v2177_v48 = vpack.c.bf16 %v735_v44, %v734_v29  ;;  %v586_v50 = vadd.f32 %v2098_v16, %v585_v47 }
 0x138   :  { %v737_v51 = vmax.f32 %v591_v46, 0.0 }
 0x139   :  { %v736_v35 = vmax.f32 %v586_v50, 0.0  ;;  %v1533_v52 = vpop.f32.mrb[44].mxu0 }
 0x13a   :  { %v601_v53 = vadd.f32 %v1533_v52, %v2098_v16  ;;  %v595_v54 = vpop.f32.mrb[45].mxu0 }
 0x13b   :  { %v2181_v55 = vpack.c.bf16 %v737_v51, %v736_v35  ;;  %v596_v57 = vadd.f32 %v2098_v16, %v595_v54 }
 0x13c   :  { %v739_v58 = vmax.f32 %v601_v53, 0.0 }
 0x13d   :  { %v738_v42 = vmax.f32 %v596_v57, 0.0  ;;  %v1536_v59 = vpop.f32.mrb[46].mxu0 }
 0x13e   :  { %v611_v60 = vadd.f32 %v1536_v59, %v2098_v16  ;;  %v605_v61 = vpop.f32.mrb[47].mxu0 }
 0x13f   :  { %v2185_v62 = vpack.c.bf16 %v739_v58, %v738_v42  ;;  %v606_v0 = vadd.f32 %v2098_v16, %v605_v61 }
 0x140   :  { %v741_v1 = vmax.f32 %v611_v60, 0.0 }
 0x141   :  { %v740_v49 = vmax.f32 %v606_v0, 0.0  ;;  %v1539_v2 = vpop.f32.mrb[48].mxu0  ;;  %v921_v0 = vld [vmem:[%s2329_s4] sm:$0xff] }
 0x142   :  { %v621_v3 = vadd.f32 %v1539_v2, %v2098_v16  ;;  %v615_v4 = vpop.f32.mrb[49].mxu0  ;;  %v925_v2 = vld [vmem:[%s2329_s4 + $0x20] sm:$0xff] }
 0x143   :  { %v2189_v5 = vpack.c.bf16 %v741_v1, %v740_v49  ;;  %v616_v7 = vadd.f32 %v2098_v16, %v615_v4  ;;  %v1752_v1 = vmov 0.0|0.0  }
 0x144   :  { %v743_v8 = vmax.f32 %v621_v3, 0.0  ;;  %v926_v3 = vld [vmem:[%s2329_s4 + $0x28] sm:$0xff] }
 0x145   :  { %v742_v56 = vmax.f32 %v616_v7, 0.0  ;;  %v1542_v9 = vpop.f32.mrb[50].mxu0  ;;  %v1689_v4 = vpack.c.bf16 %v926_v3, %v925_v2  ;;  %v928_v7 = vld [vmem:[%s2329_s4 + $0x38] sm:$0xff] }
 0x146   :  { %v631_v10 = vadd.f32 %v1542_v9, %v2098_v16  ;;  %v625_v11 = vpop.f32.mrb[51].mxu0  ;;  %v930_v9 = vld [vmem:[%s2329_s4 + $0x48] sm:$0xff] }
 0x147   :  { %v1650_v12 = vpack.c.bf16 %v743_v8, %v742_v56  ;;  %v626_v15 = vadd.f32 %v2098_v16, %v625_v11  ;;  %v929_v56 = vld [vmem:[%s2329_s4 + $0x40] sm:$0xff]  ;;  %v931_v11 = vld [vmem:[%s2329_s4 + $0x50] sm:$0xff] }
 0x148   :  { %v745_v17 = vmax.f32 %v631_v10, 0.0  ;;  %v1695_v10 = vpack.c.bf16 %v930_v9, %v929_v56 }
 0x149   :  { %v744_v63 = vmax.f32 %v626_v15, 0.0  ;;  %v1545_v18 = vpop.f32.mrb[52].mxu0  ;;  %1651 = vmatprep.subr.bf16.mxu1 %v1650_v12  ;;  %v932_v12 = vld [vmem:[%s2329_s4 + $0x58] sm:$0xff] }
 0x14a   :  { %v641_v19 = vadd.f32 %v1545_v18, %v2098_v16  ;;  %v635_v21 = vpop.f32.mrb[53].mxu0  ;;  %1653 = vmatpush3.bf16.msra.mxu1 %v2160_v20  ;;  %v1698_v15 = vpack.c.bf16 %v932_v12, %v931_v11 }
 0x14b   :  { %v1654_v6 = vpack.c.bf16 %v745_v17, %v744_v63  ;;  %v636_v22 = vadd.f32 %v2098_v16, %v635_v21  ;;  %v1754_v17 = vmov 0.0  }
 0x14c   :  { %v747_v24 = vmax.f32 %v641_v19, 0.0 }
 0x14d   :  { %v746_v25 = vmax.f32 %v636_v22, 0.0  ;;  %v1548_v26 = vpop.f32.mrb[54].mxu0  ;;  %1655 = vmatprep.subr.bf16.mxu1 %v1654_v6 }
 0x14e   :  { %v651_v13 = vadd.f32 %v1548_v26, %v2098_v16  ;;  %v645_v28 = vpop.f32.mrb[55].mxu0  ;;  %1657 = vmatpush3.bf16.msra.mxu1 %v2165_v27 }
 0x14f   :  { %v1658_v30 = vpack.c.bf16 %v747_v24, %v746_v25  ;;  %v646_v31 = vadd.f32 %v2098_v16, %v645_v28  ;;  %v1287_v25 = vld [vmem:[%s2330_s5] ss:$0 sm:$0xff] }
 0x150   :  { %v749_v32 = vmax.f32 %v651_v13, 0.0 }
 0x151   :  { %v748_v33 = vmax.f32 %v646_v31, 0.0  ;;  %v1551_v36 = vpop.f32.mrb[56].mxu0  ;;  %1659 = vmatprep.subr.bf16.mxu1 %v1658_v30  ;;  %v1022_v31 = vld [vmem:[%s2332_s7] sm:$0xff] }
 0x152   :  { %v661_v20 = vadd.f32 %v1551_v36, %v2098_v16  ;;  %v655_v37 = vpop.f32.mrb[57].mxu0  ;;  %1661 = vmatpush3.bf16.msra.mxu1 %v2169_v34 }
 0x153   :  { %v1662_v14 = vpack.c.bf16 %v749_v32, %v748_v33  ;;  %v656_v38 = vadd.f32 %v2098_v16, %v655_v37  ;;  %v1023_v32 = vld [vmem:[%s2332_s7 + $0x8] sm:$0xff]  ;;  %v1024_v33 = vld [vmem:[%s2332_s7 + $0x10] sm:$0xff] }
 0x154   :  { %v751_v39 = vmax.f32 %v661_v20, 0.0  ;;  %v1701_v36 = vpack.c.bf16 %v1023_v32, %v1022_v31  ;;  %v1025_v20 = vld [vmem:[%s2332_s7 + $0x18] sm:$0x3f] }
 0x155   :  { %v750_v40 = vmax.f32 %v656_v38, 0.0  ;;  %v1554_v43 = vpop.f32.mrb[58].mxu0  ;;  %1663 = vmatprep.subr.bf16.mxu1 %v1662_v14  ;;  %v1704_v37 = vpack.c.bf16 %v1025_v20, %v1024_v33 }
 0x156   :  { %v671_v27 = vadd.f32 %v1554_v43, %v2098_v16  ;;  %v665_v44 = vpop.f32.mrb[59].mxu0  ;;  %1665 = vmatpush3.bf16.msra.mxu1 %v2173_v41 }
 0x157   :  { %v1666_v29 = vpack.c.bf16 %v751_v39, %v750_v40  ;;  %v666_v45 = vadd.f32 %v2098_v16, %v665_v44  ;;  %v1110_v44 = vld [vmem:[%s2333_s8 + $0x8] sm:$0xff] }
 0x158   :  { %v753_v46 = vmax.f32 %v671_v27, 0.0  ;;  %v1109_v27 = vld [vmem:[%s2333_s8] sm:$0xff] }
 0x159   :  { %v752_v47 = vmax.f32 %v666_v45, 0.0  ;;  %v1557_v50 = vpop.f32.mrb[60].mxu0  ;;  %1667 = vmatprep.subr.bf16.mxu1 %v1666_v29  ;;  %v1708_v29 = vpack.c.bf16 %v1110_v44, %v1109_v27  ;;  %v1111_v45 = vld [vmem:[%s2333_s8 + $0x10] sm:$0xff] }
 0x15a   :  { %v681_v34 = vadd.f32 %v1557_v50, %v2098_v16  ;;  %v675_v51 = vpop.f32.mrb[61].mxu0  ;;  %1669 = vmatpush3.bf16.msra.mxu1 %v2177_v48 }
 0x15b   :  { %v1670_v35 = vpack.c.bf16 %v753_v46, %v752_v47  ;;  %v676_v52 = vadd.f32 %v2098_v16, %v675_v51  ;;  %v1112_v46 = vld [vmem:[%s2333_s8 + $0x18] sm:$0x3f] }
 0x15c   :  { %v755_v53 = vmax.f32 %v681_v34, 0.0  ;;  %v1711_v47 = vpack.c.bf16 %v1112_v46, %v1111_v45 }
 0x15d   :  { %v754_v54 = vmax.f32 %v676_v52, 0.0  ;;  %v1560_v57 = vpop.f32.mrb[62].mxu0  ;;  %1671 = vmatprep.subr.bf16.mxu1 %v1670_v35 }
 0x15e   :  { %v691_v41 = vadd.f32 %v1560_v57, %v2098_v16  ;;  %v685_v58 = vpop.f32.mrb[63].mxu0  ;;  %1673 = vmatpush3.bf16.msra.mxu1 %v2181_v55  ;;  %v922_v55 = vld [vmem:[%s2329_s4 + $0x8] sm:$0xff] }
 0x15f   :  { %v1674_v42 = vpack.c.bf16 %v755_v53, %v754_v54  ;;  %v686_v59 = vadd.f32 %v2098_v16, %v685_v58  ;;  %v923_v16 = vld [vmem:[%s2329_s4 + $0x10] sm:$0xff]  ;;  %v1191_v54 = vld [vmem:[%s2326_s1] sm:$0x3]  ;;  %s1727_s1 = scalar_lea.vmem %s1208_s17, 32 }
 0x160   :  { %v757_v60 = vmax.f32 %v691_v41, 0.0  ;;  %p1728_p0 = scmp.ne.s32.totalorder %s1208_s17, %s1727_s1  ;;  %p1733_p2 = scmp.lt.s32.totalorder %s1727_s1, %s1727_s1 }
 0x161   :  { %v756_v61 = vmax.f32 %v686_v59, 0.0  ;;  %1675 = vmatprep.subr.bf16.mxu1 %v1674_v42 }
 0x162   :  { %1677 = vmatpush3.bf16.msra.mxu1 %v2185_v62  ;;  %v1683_v62 = vpack.c.bf16 %v922_v55, %v921_v0  ;;  %p1734_p3 = por %p1733_p2, %p1732_p1 }
 0x163   :  { %v1678_v48 = vpack.c.bf16 %v757_v60, %v756_v61 }
 0x164   :  { %p1735_p4 = pnand %p1734_p3, %p1728_p0 }
 0x165   :  { %1679 = vmatprep.subr.bf16.mxu1 %v1678_v48 }
 0x166   :  { %1681 = vmatpush3.bf16.msra.mxu1 %v2189_v5  ;;  %v927_v5 = vld [vmem:[%s2329_s4 + $0x30] sm:$0xff] }
 0x167   :  { %1682 = vmatprep.subr.bf16.mxu1 %v1752_v1  ;;  %v1692_v8 = vpack.c.bf16 %v928_v7, %v927_v5 }
 0x169   :  { %916 = vmatmul.mubr.f32.vlgmr.msra.gmra.mrb[2].mxu1 %v2102_v23  ;;  %v924_v23 = vld [vmem:[%s2329_s4 + $0x18] sm:$0xff] }
 0x16a   :  { %1684 = vmatpush3.bf16.msra.mxu1 %v1683_v62  ;;  %v1686_v49 = vpack.c.bf16 %v924_v23, %v923_v16  ;;  %1585 = vmatprep.mubr.msk.f32.mxu1 %vm1753_vm2, %v1754_v17 }
 0x16b   :  { %1685 = vmatprep.subr.bf16.mxu1 %v1752_v1 }
 0x16e   :  { %1687 = vmatpush3.bf16.msra.mxu1 %v1686_v49 }
 0x16f   :  { %1688 = vmatprep.subr.bf16.mxu1 %v1752_v1 }
 0x172   :  { %1690 = vmatpush3.bf16.msra.mxu1 %v1689_v4 }
 0x173   :  { %1691 = vmatprep.subr.bf16.mxu1 %v1752_v1 }
 0x176   :  { %1693 = vmatpush3.bf16.msra.mxu1 %v1692_v8 }
 0x177   :  { %1694 = vmatprep.subr.bf16.mxu1 %v1752_v1 }
 0x17a   :  { %1696 = vmatpush3.bf16.msra.mxu1 %v1695_v10 }
 0x17b   :  { %1697 = vmatprep.subr.bf16.mxu1 %v1752_v1 }
 0x17e   :  { %1699 = vmatpush3.bf16.msra.mxu1 %v1698_v15 }
 0x17f   :  { %1700 = vmatprep.subr.bf16.mxu1 %v1752_v1 }
 0x1fc   :  { %v1394_v63 = vpop.f32.mrb[0].mxu1 }
 0x1fd   :  { %v1395_v18 = vpop.f32.mrb[1].mxu1 }
 0x1fe   :  { %v1396_v19 = vadd.f32 %v1395_v18, %v1394_v63 }
 0x23c   :  { %v1429_v21 = vpop.f32.mrb[2].mxu1 }
 0x23d   :  { %v1430_v6 = vpop.f32.mrb[3].mxu1 }
 0x23e   :  { %v1431_v22 = vadd.f32 %v1430_v6, %v1429_v21 }
 0x240   :  { %v918_v24 = vadd.f32 %v1431_v22, %v1396_v19 }
 0x242   :  { %1586 = vmatmul.mubr.msk.f32.vlgmr.msra.gmra.mrb[4].mxu1 %vm940_vm3, %v918_v24 }
 0x243   :  { %1596 = vmatprep.mubr.msk.f32.mxu1 %vm1753_vm2, %v1754_v17  ;;  %1702 = vmatpush3.bf16.msra.mxu1 %v1701_v36 }
 0x244   :  { %1703 = vmatprep.subr.bf16.mxu1 %v1752_v1 }
 0x247   :  { %1706 = vmatpush3.bf16.msk.msra.mxu1 %vm2281_vm7, %v1704_v37 }
 0x248   :  { %1707 = vmatprep.subr.bf16.mxu1 %v1752_v1 }
 0x315   :  { %v1010_v26 = vpop.f32.mrb[4].mxu1 }
 0x316   :  { %v1011_v13 = vadd.f32 %v1287_v25, %v1010_v26  ;;  %v1587_v28 = vpop.f32.mrb[5].mxu1 }
 0x318   :  { %v1016_v30 = vsel %vm1014_vm4, %v1011_v13, -inf  ;;  %1015 = vst.msk [vmem:[%s2334_s9] sm:$0x3] %vm1014_vm4, %v1011_v13 }
 0x319   :  { %1017 = vmax.xlane.f32.xlu0 %v1016_v30 }
 0x3a6   :  { %v1018_v38 = vpop.xlane.xlu0 %1017 }
 0x3a7   :  { %v1019_v39 = vsub.f32 %v1011_v13, %v1018_v38 }
 0x3a9   :  { %v1020_v40 = vmul.f32 1.442695, %v1019_v39 }
 0x3ab   :  { %1721 = vpow2.f32 %v1020_v40 }
 0x3b5   :  { %v1722_v43 = vpop.eup %1721 }
 0x3b6   :  { %1597 = vmatmul.mubr.msk.f32.vlgmr.msra.gmra.mrb[6].mxu1 %vm1026_vm8, %v1722_v43 }
 0x3b7   :  { %1607 = vmatprep.mubr.msk.f32.mxu1 %vm1753_vm2, %v1754_v17  ;;  %1709 = vmatpush3.bf16.msra.mxu1 %v1708_v29 }
 0x3b8   :  { %1710 = vmatprep.subr.bf16.mxu1 %v1752_v1 }
 0x3bb   :  { %1713 = vmatpush3.bf16.msk.msra.mxu1 %vm2281_vm7, %v1711_v47 }
 0x489   :  { %v1100_v50 = vpop.f32.mrb[6].mxu1 }
 0x48a   :  { %1723 = vrcp.f32 %v1100_v50  ;;  %v1598_v34 = vpop.f32.mrb[7].mxu1 }
 0x48b   :  { %1725 = vlog2.f32 %v1100_v50 }
 0x494   :  { %v1724_v51 = vpop.eup %1723 }
 0x495   :  { %v1726_v35 = vpop.eup %1725  ;;  %v1105_v52 = vmul.f32 %v1724_v51, %v1722_v43 }
 0x496   :  { %v1107_v53 = vmul.f32 0.6931472, %v1726_v35 }
 0x497   :  { %1608 = vmatmul.mubr.msk.f32.vlgmr.msra.gmra.mrb[8].mxu1 %vm1026_vm8, %v1105_v52 }
 0x498   :  { %v1108_v57 = vsub.f32 %v1019_v39, %v1107_v53 }
 0x49a   :  { %v1192_v41 = vmul.f32 %v1191_v54, %v1108_v57 }
 0x49c   :  { %v1193_v58 = vsel %vm1014_vm4, %v1192_v41, 0.0 }
 0x49d   :  { %1194 = vadd.xlane.f32.xlu0 %v1193_v58 }
 0x52a   :  { %v1195_v42 = vpop.xlane.xlu0 %1194 }
 0x52b   :  { %v1196_v59 = vsub.f32 0.0, %v1195_v42 }
 0x52d   :  { %1198 = vst.msk [vmem:[%s2336_s11] sm:$0x3] %vm1197_vm9, %v1196_v59 }
 0x56a   :  { %v1185_v60 = vpop.f32.mrb[8].mxu1 }
 0x56b   :  { %1190 = vst.msk [vmem:[#allocation2] sm:$0x3] %vm1189_vm10, %v1185_v60  ;;  %v1609_v61 = vpop.f32.mrb[9].mxu1 }
 0x56c   :  { %1738 = shalt.err (!%p1735_p4)
}
 0x56d   :  { %s1739_s4 = scalar_lea.hbm %s2335_s10, 32 }
 0x56e   :  { %p1740_p5 = scmp.ne.s32.totalorder %s2335_s10, %s1739_s4  ;;  %p1743_p6 = scmp.lt.u32.totalorder %s1739_s4, %s2335_s10 }
 0x570   :  { %p1745_p7 = pnand %p1743_p6, %p1740_p5 }
 0x572   :  { %1748 = shalt.err (!%p1745_p7)
}
 0x573   :  { %1210 = dma.vmem_to_hbm [thread:$0]  %s1208_s17, 32, %s2335_s10, [#allocation3]  }
 0x574   :  { %1749 = dma.done.wait [#allocation3], 32  }
 0x575   :  { %1750 = vsyncadd [#allocation3], 4294967264 }
 0x576   :  { %1220 = vsyncpa [#allocation3], 1 }

</bundles_post_ra>
